<compile_context>
chip_gen: v7x
topology: tpu7x:2x2x1
jax: 0.10.0
libtpu: 0.0.40
codegen_flags: <defaults>
</compile_context>

<pallas_src>
import jax
import jax.numpy as jnp
from jax.experimental import pallas as pl
from jax.experimental.pallas import tpu as pltpu


COMPUTE_DTYPE = jnp.bfloat16   # MXU operands / inter-layer activations
TILE_M_MAX = 512               # rows of the im2col GEMM per grid step
_ROW_ALIGN = 16                # sublane alignment (covers bf16 (16,128) packing)


def _round_up(x, m):
    return (x + m - 1) // m * m


# ---------------------------------------------------------------------------
# Pallas kernels
# ---------------------------------------------------------------------------
def _gemm_bias_relu_kernel(x_ref, w_ref, b_ref, o_ref):
    # o = relu(x @ w + b), f32 accumulation, f32 epilogue.
    acc = jnp.dot(x_ref[...], w_ref[...], preferred_element_type=jnp.float32)
    o_ref[...] = jnp.maximum(acc + b_ref[...], 0.0).astype(o_ref.dtype)


def _conv4_heads_kernel(x_ref, w4_ref, b4_ref, wh_ref, bh_ref, o_ref):
    # Fused: relu(conv4) -> one concatenated 1x1-conv head GEMM -> softmaxes.
    # Output layout per row: [cls0, cls1, rot0, rot1, bbox0, bbox1, bbox2, pad]
    feat = jnp.dot(x_ref[...], w4_ref[...], preferred_element_type=jnp.float32)
    feat = jnp.maximum(feat + b4_ref[...], 0.0)
    logits = jnp.dot(feat.astype(wh_ref.dtype), wh_ref[...],
                     preferred_element_type=jnp.float32) + bh_ref[...]

    def softmax_lastdim(z):
        z = z - jnp.max(z, axis=-1, keepdims=True)
        e = jnp.exp(z)
        # EUP approximate reciprocal for the normalizer (off the VALU).
        inv = pl.reciprocal(jnp.sum(e, axis=-1, keepdims=True), approx=True)
        return e * inv

    cls = softmax_lastdim(logits[:, 0:2])
    rot = softmax_lastdim(logits[:, 2:4])
    # Single packed store: one (tile_m, 8) slab instead of three narrow outputs.
    o_ref[...] = jnp.concatenate([cls, rot, logits[:, 4:8]],
                                 axis=-1).astype(o_ref.dtype)


# ---------------------------------------------------------------------------
# Host-side helpers (lane-dense im2col + row padding for tiling)
# ---------------------------------------------------------------------------
def _im2col(x, kh, kw, stride):
    """x: [N,H,W,Cin] -> patches [N*Ho*Wo, kh*kw*Cin], K flattened (kh,kw,Cin)."""
    N, H, W, Cin = x.shape
    Ho = (H - kh) // stride + 1
    Wo = (W - kw) // stride + 1
    cols = []
    for i in range(kh):
        for j in range(kw):
            cols.append(x[:, i:i + stride * Ho:stride, j:j + stride * Wo:stride, :])
    patches = jnp.concatenate(cols, axis=-1)            # lane-dense K
    return patches.reshape(N * Ho * Wo, kh * kw * Cin), Ho, Wo


def _pad_rows(patches):
    """Pad the M (rows) dim so it is a multiple of the chosen tile size."""
    P = patches.shape[0]
    tile_m = min(TILE_M_MAX, _round_up(P, _ROW_ALIGN))
    P_pad = _round_up(P, tile_m)
    if P_pad != P:
        patches = jnp.pad(patches, ((0, P_pad - P), (0, 0)))
    return patches, tile_m, P_pad


# ---------------------------------------------------------------------------
# Conv layers
# ---------------------------------------------------------------------------
def conv2d_relu(x, w, b, stride):
    """Valid conv + ReLU via lane-dense im2col + tiled Pallas GEMM.

    x: [N,H,W,Cin]   w: [kh,kw,Cin,Cout]   b: [Cout]
    """
    N, H, W, Cin = x.shape
    kh, kw, _, Cout = w.shape
    patches, Ho, Wo = _im2col(x, kh, kw, stride)
    P = N * Ho * Wo
    patches, tile_m, P_pad = _pad_rows(patches)
    K = kh * kw * Cin

    patches = patches.astype(COMPUTE_DTYPE)
    w2 = w.reshape(K, Cout).astype(COMPUTE_DTYPE)
    b2 = b.reshape(1, Cout).astype(jnp.float32)

    out_itemsize = jnp.zeros((), COMPUTE_DTYPE).dtype.itemsize
    cost = pl.CostEstimate(
        flops=2 * P_pad * K * Cout,
        transcendentals=0,
        bytes_accessed=(patches.size * patches.dtype.itemsize
                        + w2.size * w2.dtype.itemsize
                        + b2.size * 4
                        + P_pad * Cout * out_itemsize),
    )

    out = pl.pallas_call(
        _gemm_bias_relu_kernel,
        out_shape=jax.ShapeDtypeStruct((P_pad, Cout), COMPUTE_DTYPE),
        grid=(P_pad // tile_m,),
        in_specs=[
            pl.BlockSpec((tile_m, K), lambda i: (i, 0)),
            pl.BlockSpec((K, Cout), lambda i: (0, 0)),
            pl.BlockSpec((1, Cout), lambda i: (0, 0)),
        ],
        out_specs=pl.BlockSpec((tile_m, Cout), lambda i: (i, 0)),
        compiler_params=pltpu.CompilerParams(dimension_semantics=("parallel",)),
        cost_estimate=cost,
    )(patches, w2, b2)
    return out[:P].reshape(N, Ho, Wo, Cout)


def conv4_and_heads(x, params):
    """Fused conv4 (k2 s1) + three 1x1-conv heads. Returns NCHW outputs."""
    w4, b4 = params["conv4"]
    N, H, W, Cin = x.shape
    kh, kw, _, C4 = w4.shape                            # 2, 2, 64, 128
    patches, Ho, Wo = _im2col(x, kh, kw, 1)
    P = N * Ho * Wo
    patches, tile_m, P_pad = _pad_rows(patches)
    K = kh * kw * Cin

    (wc, bc), (wr, br), (wb, bb) = params["cls"], params["rot"], params["bbox"]
    # One concatenated [128, 7] head weight, padded to 8 lanes.
    wh = jnp.concatenate([wc, wr, wb], axis=1)
    wh = jnp.pad(wh, ((0, 0), (0, 8 - wh.shape[1])))
    bh = jnp.pad(jnp.concatenate([bc, br, bb]), (0, 1)).reshape(1, 8)

    patches = patches.astype(COMPUTE_DTYPE)
    w4m = w4.reshape(K, C4).astype(COMPUTE_DTYPE)
    b4m = b4.reshape(1, C4).astype(jnp.float32)
    wh = wh.astype(COMPUTE_DTYPE)
    bh = bh.astype(jnp.float32)

    cost = pl.CostEstimate(
        flops=2 * P_pad * K * C4 + 2 * P_pad * C4 * 8,
        transcendentals=6 * P_pad,   # 4 exps + 2 reciprocals per output pixel
        bytes_accessed=(patches.size * patches.dtype.itemsize
                        + w4m.size * w4m.dtype.itemsize
                        + wh.size * wh.dtype.itemsize
                        + (b4m.size + bh.size) * 4
                        + P_pad * 8 * 4),
    )

    head = pl.pallas_call(
        _conv4_heads_kernel,
        out_shape=jax.ShapeDtypeStruct((P_pad, 8), jnp.float32),
        grid=(P_pad // tile_m,),
        in_specs=[
            pl.BlockSpec((tile_m, K), lambda i: (i, 0)),
            pl.BlockSpec((K, C4), lambda i: (0, 0)),
            pl.BlockSpec((1, C4), lambda i: (0, 0)),
            pl.BlockSpec((C4, 8), lambda i: (0, 0)),
            pl.BlockSpec((1, 8), lambda i: (0, 0)),
        ],
        out_specs=pl.BlockSpec((tile_m, 8), lambda i: (i, 0)),
        compiler_params=pltpu.CompilerParams(dimension_semantics=("parallel",)),
        cost_estimate=cost,
    )(patches, w4m, b4m, wh, bh)

    head = head[:P]                                     # (P, 8) packed heads

    def to_nchw(y, c):
        return y.reshape(N, Ho, Wo, c).transpose(0, 3, 1, 2)

    return (to_nchw(head[:, 0:2], 2),    # cls softmax
            to_nchw(head[:, 2:4], 2),    # rotate softmax
            to_nchw(head[:, 4:7], 3))    # bbox (raw)


# ---------------------------------------------------------------------------
# Parameters and forward
# ---------------------------------------------------------------------------
def init_params(key):
    """Deterministic synthetic parameters matching PCN1's layer shapes."""
    def conv_init(key, kh, kw, cin, cout):
        kw_, kb_ = jax.random.split(key)
        fan_in = kh * kw * cin
        w = jax.random.normal(kw_, (kh, kw, cin, cout), jnp.float32) * (1.0 / fan_in) ** 0.5
        b = jax.random.normal(kb_, (cout,), jnp.float32) * 0.01
        return w, b

    keys = jax.random.split(key, 7)
    params = {
        "conv1": conv_init(keys[0], 3, 3, 3, 16),
        "conv2": conv_init(keys[1], 3, 3, 16, 32),
        "conv3": conv_init(keys[2], 3, 3, 32, 64),
        "conv4": conv_init(keys[3], 2, 2, 64, 128),
    }
    wc, bc = conv_init(keys[4], 1, 1, 128, 2)
    wr, br = conv_init(keys[5], 1, 1, 128, 2)
    wb, bb = conv_init(keys[6], 1, 1, 128, 3)
    params["cls"] = (wc.reshape(128, 2), bc)
    params["rot"] = (wr.reshape(128, 2), br)
    params["bbox"] = (wb.reshape(128, 3), bb)
    return params


def pcn1_forward(x_nchw, params):
    """x_nchw: [N, 3, H, W] float32 (PyTorch convention). Returns NCHW outputs."""
    x = jnp.transpose(x_nchw, (0, 2, 3, 1)).astype(COMPUTE_DTYPE)   # -> NHWC
    x = conv2d_relu(x, *params["conv1"], stride=2)                  # k3 s2
    x = conv2d_relu(x, *params["conv2"], stride=2)                  # k3 s2
    x = conv2d_relu(x, *params["conv3"], stride=2)                  # k3 s2
    return conv4_and_heads(x, params)                               # k2 s1 + heads


if __name__ == "__main__":
    key = jax.random.PRNGKey(0)
    k_param, k_input = jax.random.split(key)

    params = init_params(k_param)
    # Classic PCN stage-1 input size 24x24 (gives 1x1 spatial output).
    x = jax.random.normal(k_input, (2, 3, 24, 24), jnp.float32)

    fwd = jax.jit(pcn1_forward)
    cls_prob, rotate, bbox = fwd(x, params)
    jax.block_until_ready((cls_prob, rotate, bbox))

    assert cls_prob.shape == (2, 2, 1, 1)
    assert rotate.shape == (2, 2, 1, 1)
    assert bbox.shape == (2, 3, 1, 1)
    # Softmax heads must sum to ~1 over the channel axis (tolerance covers the
    # approximate EUP reciprocal used for the softmax normalizer).
    assert jnp.allclose(jnp.sum(cls_prob, axis=1), 1.0, atol=5e-3)
    assert jnp.allclose(jnp.sum(rotate, axis=1), 1.0, atol=5e-3)

    print("KERNEL_OK")
</pallas_src>

<mosaic_0001>
module attributes {stable_mosaic.version = 11 : i64} {
  func.func @_gemm_bias_relu_kernel(%arg0: i32, %arg1: memref<256x27xbf16, #tpu.memory_space<vmem>>, %arg2: memref<27x16xbf16, #tpu.memory_space<vmem>>, %arg3: memref<1x16xf32, #tpu.memory_space<vmem>>, %arg4: memref<256x16xbf16, #tpu.memory_space<vmem>>) attributes {dimension_semantics = [#tpu.dimension_semantics<parallel>], iteration_bounds = array<i64: 1>, scalar_prefetch = 0 : i64, scratch_operands = 0 : i64, tpu.core_type = #tpu.core_type<tc>, window_params = [{transform_indices = @transform_0, window_bounds = array<i64: 256, 27>}, {pipeline_mode = #tpu.pipeline_mode<synchronous>, transform_indices = @transform_1, window_bounds = array<i64: 27, 16>}, {pipeline_mode = #tpu.pipeline_mode<synchronous>, transform_indices = @transform_2, window_bounds = array<i64: 1, 16>}, {transform_indices = @transform_3, window_bounds = array<i64: 256, 16>}]} {
    %c0 = arith.constant 0 : index
    %c0_0 = arith.constant 0 : index
    %0 = vector.load %arg1[%c0, %c0_0] : memref<256x27xbf16, #tpu.memory_space<vmem>>, vector<256x27xbf16>
    %c0_1 = arith.constant 0 : index
    %c0_2 = arith.constant 0 : index
    %1 = vector.load %arg2[%c0_1, %c0_2] : memref<27x16xbf16, #tpu.memory_space<vmem>>, vector<27x16xbf16>
    %cst = arith.constant dense<0.000000e+00> : vector<256x16xf32>
    %2 = tpu.matmul %0, %1, %cst {dimension_numbers = #tpu.dot_dimension_numbers<[1], [0], [0], [1], [0, 0, 1, 1], [], []>} : vector<256x27xbf16>, vector<27x16xbf16>, vector<256x16xf32> -> vector<256x16xf32>
    %c0_3 = arith.constant 0 : index
    %c0_4 = arith.constant 0 : index
    %3 = vector.load %arg3[%c0_3, %c0_4] : memref<1x16xf32, #tpu.memory_space<vmem>>, vector<1x16xf32>
    %4 = vector.broadcast %3 : vector<1x16xf32> to vector<256x16xf32>
    %5 = arith.addf %2, %4 : vector<256x16xf32>
    %cst_5 = arith.constant 0.000000e+00 : f32
    %6 = vector.broadcast %cst_5 : f32 to vector<256x16xf32>
    %7 = arith.maximumf %5, %6 : vector<256x16xf32>
    %8 = arith.truncf %7 : vector<256x16xf32> to vector<256x16xbf16>
    %c0_6 = arith.constant 0 : index
    %c0_7 = arith.constant 0 : index
    %9 = vector.load %arg4[%c0_6, %c0_7] : memref<256x16xbf16, #tpu.memory_space<vmem>>, vector<256x16xbf16>
    tpu.vector_store %arg4[%c0_6, %c0_7], %8 {strides = array<i32>} : memref<256x16xbf16, #tpu.memory_space<vmem>>, vector<256x16xbf16>,
    return
  }
  func.func @transform_0(%arg0: i32) -> (i32, i32) {
    %c0_i32 = arith.constant 0 : i32
    %c0_i32_0 = arith.constant 0 : i32
    return %arg0, %c0_i32 : i32, i32
  }
  func.func @transform_1(%arg0: i32) -> (i32, i32) {
    %c0_i32 = arith.constant 0 : i32
    %c0_i32_0 = arith.constant 0 : i32
    %c0_i32_1 = arith.constant 0 : i32
    return %c0_i32, %c0_i32_0 : i32, i32
  }
  func.func @transform_2(%arg0: i32) -> (i32, i32) {
    %c0_i32 = arith.constant 0 : i32
    %c0_i32_0 = arith.constant 0 : i32
    %c0_i32_1 = arith.constant 0 : i32
    return %c0_i32, %c0_i32_0 : i32, i32
  }
  func.func @transform_3(%arg0: i32) -> (i32, i32) {
    %c0_i32 = arith.constant 0 : i32
    %c0_i32_0 = arith.constant 0 : i32
    return %arg0, %c0_i32 : i32, i32
  }
}

module attributes {stable_mosaic.version = 11 : i64} {
  func.func @_gemm_bias_relu_kernel(%arg0: i32, %arg1: memref<64x144xbf16, #tpu.memory_space<vmem>>, %arg2: memref<144x32xbf16, #tpu.memory_space<vmem>>, %arg3: memref<1x32xf32, #tpu.memory_space<vmem>>, %arg4: memref<64x32xbf16, #tpu.memory_space<vmem>>) attributes {dimension_semantics = [#tpu.dimension_semantics<parallel>], iteration_bounds = array<i64: 1>, scalar_prefetch = 0 : i64, scratch_operands = 0 : i64, tpu.core_type = #tpu.core_type<tc>, window_params = [{transform_indices = @transform_0, window_bounds = array<i64: 64, 144>}, {pipeline_mode = #tpu.pipeline_mode<synchronous>, transform_indices = @transform_1, window_bounds = array<i64: 144, 32>}, {pipeline_mode = #tpu.pipeline_mode<synchronous>, transform_indices = @transform_2, window_bounds = array<i64: 1, 32>}, {transform_indices = @transform_3, window_bounds = array<i64: 64, 32>}]} {
    %c0 = arith.constant 0 : index
    %c0_0 = arith.constant 0 : index
    %0 = vector.load %arg1[%c0, %c0_0] : memref<64x144xbf16, #tpu.memory_space<vmem>>, vector<64x144xbf16>
    %c0_1 = arith.constant 0 : index
    %c0_2 = arith.constant 0 : index
    %1 = vector.load %arg2[%c0_1, %c0_2] : memref<144x32xbf16, #tpu.memory_space<vmem>>, vector<144x32xbf16>
    %cst = arith.constant dense<0.000000e+00> : vector<64x32xf32>
    %2 = tpu.matmul %0, %1, %cst {dimension_numbers = #tpu.dot_dimension_numbers<[1], [0], [0], [1], [0, 0, 1, 1], [], []>} : vector<64x144xbf16>, vector<144x32xbf16>, vector<64x32xf32> -> vector<64x32xf32>
    %c0_3 = arith.constant 0 : index
    %c0_4 = arith.constant 0 : index
    %3 = vector.load %arg3[%c0_3, %c0_4] : memref<1x32xf32, #tpu.memory_space<vmem>>, vector<1x32xf32>
    %4 = vector.broadcast %3 : vector<1x32xf32> to vector<64x32xf32>
    %5 = arith.addf %2, %4 : vector<64x32xf32>
    %cst_5 = arith.constant 0.000000e+00 : f32
    %6 = vector.broadcast %cst_5 : f32 to vector<64x32xf32>
    %7 = arith.maximumf %5, %6 : vector<64x32xf32>
    %8 = arith.truncf %7 : vector<64x32xf32> to vector<64x32xbf16>
    %c0_6 = arith.constant 0 : index
    %c0_7 = arith.constant 0 : index
    %9 = vector.load %arg4[%c0_6, %c0_7] : memref<64x32xbf16, #tpu.memory_space<vmem>>, vector<64x32xbf16>
    tpu.vector_store %arg4[%c0_6, %c0_7], %8 {strides = array<i32>} : memref<64x32xbf16, #tpu.memory_space<vmem>>, vector<64x32xbf16>,
    return
  }
  func.func @transform_0(%arg0: i32) -> (i32, i32) {
    %c0_i32 = arith.constant 0 : i32
    %c0_i32_0 = arith.constant 0 : i32
    return %arg0, %c0_i32 : i32, i32
  }
  func.func @transform_1(%arg0: i32) -> (i32, i32) {
    %c0_i32 = arith.constant 0 : i32
    %c0_i32_0 = arith.constant 0 : i32
    %c0_i32_1 = arith.constant 0 : i32
    return %c0_i32, %c0_i32_0 : i32, i32
  }
  func.func @transform_2(%arg0: i32) -> (i32, i32) {
    %c0_i32 = arith.constant 0 : i32
    %c0_i32_0 = arith.constant 0 : i32
    %c0_i32_1 = arith.constant 0 : i32
    return %c0_i32, %c0_i32_0 : i32, i32
  }
  func.func @transform_3(%arg0: i32) -> (i32, i32) {
    %c0_i32 = arith.constant 0 : i32
    %c0_i32_0 = arith.constant 0 : i32
    return %arg0, %c0_i32 : i32, i32
  }
}

module attributes {stable_mosaic.version = 11 : i64} {
  func.func @_gemm_bias_relu_kernel(%arg0: i32, %arg1: memref<16x288xbf16, #tpu.memory_space<vmem>>, %arg2: memref<288x64xbf16, #tpu.memory_space<vmem>>, %arg3: memref<1x64xf32, #tpu.memory_space<vmem>>, %arg4: memref<16x64xbf16, #tpu.memory_space<vmem>>) attributes {dimension_semantics = [#tpu.dimension_semantics<parallel>], iteration_bounds = array<i64: 1>, scalar_prefetch = 0 : i64, scratch_operands = 0 : i64, tpu.core_type = #tpu.core_type<tc>, window_params = [{transform_indices = @transform_0, window_bounds = array<i64: 16, 288>}, {pipeline_mode = #tpu.pipeline_mode<synchronous>, transform_indices = @transform_1, window_bounds = array<i64: 288, 64>}, {pipeline_mode = #tpu.pipeline_mode<synchronous>, transform_indices = @transform_2, window_bounds = array<i64: 1, 64>}, {transform_indices = @transform_3, window_bounds = array<i64: 16, 64>}]} {
    %c0 = arith.constant 0 : index
    %c0_0 = arith.constant 0 : index
    %0 = vector.load %arg1[%c0, %c0_0] : memref<16x288xbf16, #tpu.memory_space<vmem>>, vector<16x288xbf16>
    %c0_1 = arith.constant 0 : index
    %c0_2 = arith.constant 0 : index
    %1 = vector.load %arg2[%c0_1, %c0_2] : memref<288x64xbf16, #tpu.memory_space<vmem>>, vector<288x64xbf16>
    %cst = arith.constant dense<0.000000e+00> : vector<16x64xf32>
    %2 = tpu.matmul %0, %1, %cst {dimension_numbers = #tpu.dot_dimension_numbers<[1], [0], [0], [1], [0, 0, 1, 1], [], []>} : vector<16x288xbf16>, vector<288x64xbf16>, vector<16x64xf32> -> vector<16x64xf32>
    %c0_3 = arith.constant 0 : index
    %c0_4 = arith.constant 0 : index
    %3 = vector.load %arg3[%c0_3, %c0_4] : memref<1x64xf32, #tpu.memory_space<vmem>>, vector<1x64xf32>
    %4 = vector.broadcast %3 : vector<1x64xf32> to vector<16x64xf32>
    %5 = arith.addf %2, %4 : vector<16x64xf32>
    %cst_5 = arith.constant 0.000000e+00 : f32
    %6 = vector.broadcast %cst_5 : f32 to vector<16x64xf32>
    %7 = arith.maximumf %5, %6 : vector<16x64xf32>
    %8 = arith.truncf %7 : vector<16x64xf32> to vector<16x64xbf16>
    %c0_6 = arith.constant 0 : index
    %c0_7 = arith.constant 0 : index
    %9 = vector.load %arg4[%c0_6, %c0_7] : memref<16x64xbf16, #tpu.memory_space<vmem>>, vector<16x64xbf16>
    tpu.vector_store %arg4[%c0_6, %c0_7], %8 {strides = array<i32>} : memref<16x64xbf16, #tpu.memory_space<vmem>>, vector<16x64xbf16>,
    return
  }
  func.func @transform_0(%arg0: i32) -> (i32, i32) {
    %c0_i32 = arith.constant 0 : i32
    %c0_i32_0 = arith.constant 0 : i32
    return %arg0, %c0_i32 : i32, i32
  }
  func.func @transform_1(%arg0: i32) -> (i32, i32) {
    %c0_i32 = arith.constant 0 : i32
    %c0_i32_0 = arith.constant 0 : i32
    %c0_i32_1 = arith.constant 0 : i32
    return %c0_i32, %c0_i32_0 : i32, i32
  }
  func.func @transform_2(%arg0: i32) -> (i32, i32) {
    %c0_i32 = arith.constant 0 : i32
    %c0_i32_0 = arith.constant 0 : i32
    %c0_i32_1 = arith.constant 0 : i32
    return %c0_i32, %c0_i32_0 : i32, i32
  }
  func.func @transform_3(%arg0: i32) -> (i32, i32) {
    %c0_i32 = arith.constant 0 : i32
    %c0_i32_0 = arith.constant 0 : i32
    return %arg0, %c0_i32 : i32, i32
  }
}

module attributes {stable_mosaic.version = 11 : i64} {
  func.func @_conv4_heads_kernel(%arg0: i32, %arg1: memref<16x256xbf16, #tpu.memory_space<vmem>>, %arg2: memref<256x128xbf16, #tpu.memory_space<vmem>>, %arg3: memref<1x128xf32, #tpu.memory_space<vmem>>, %arg4: memref<128x8xbf16, #tpu.memory_space<vmem>>, %arg5: memref<1x8xf32, #tpu.memory_space<vmem>>, %arg6: memref<16x8xf32, #tpu.memory_space<vmem>>) attributes {dimension_semantics = [#tpu.dimension_semantics<parallel>], iteration_bounds = array<i64: 1>, scalar_prefetch = 0 : i64, scratch_operands = 0 : i64, tpu.core_type = #tpu.core_type<tc>, window_params = [{transform_indices = @transform_0, window_bounds = array<i64: 16, 256>}, {pipeline_mode = #tpu.pipeline_mode<synchronous>, transform_indices = @transform_1, window_bounds = array<i64: 256, 128>}, {pipeline_mode = #tpu.pipeline_mode<synchronous>, transform_indices = @transform_2, window_bounds = array<i64: 1, 128>}, {pipeline_mode = #tpu.pipeline_mode<synchronous>, transform_indices = @transform_3, window_bounds = array<i64: 128, 8>}, {pipeline_mode = #tpu.pipeline_mode<synchronous>, transform_indices = @transform_4, window_bounds = array<i64: 1, 8>}, {transform_indices = @transform_5, window_bounds = array<i64: 16, 8>}]} {
    %c0 = arith.constant 0 : index
    %c0_0 = arith.constant 0 : index
    %0 = vector.load %arg1[%c0, %c0_0] : memref<16x256xbf16, #tpu.memory_space<vmem>>, vector<16x256xbf16>
    %c0_1 = arith.constant 0 : index
    %c0_2 = arith.constant 0 : index
    %1 = vector.load %arg2[%c0_1, %c0_2] : memref<256x128xbf16, #tpu.memory_space<vmem>>, vector<256x128xbf16>
    %cst = arith.constant dense<0.000000e+00> : vector<16x128xf32>
    %2 = tpu.matmul %0, %1, %cst {dimension_numbers = #tpu.dot_dimension_numbers<[1], [0], [0], [1], [0, 0, 1, 1], [], []>} : vector<16x256xbf16>, vector<256x128xbf16>, vector<16x128xf32> -> vector<16x128xf32>
    %c0_3 = arith.constant 0 : index
    %c0_4 = arith.constant 0 : index
    %3 = vector.load %arg3[%c0_3, %c0_4] : memref<1x128xf32, #tpu.memory_space<vmem>>, vector<1x128xf32>
    %4 = vector.broadcast %3 : vector<1x128xf32> to vector<16x128xf32>
    %5 = arith.addf %2, %4 : vector<16x128xf32>
    %cst_5 = arith.constant 0.000000e+00 : f32
    %6 = vector.broadcast %cst_5 : f32 to vector<16x128xf32>
    %7 = arith.maximumf %5, %6 : vector<16x128xf32>
    %8 = arith.truncf %7 : vector<16x128xf32> to vector<16x128xbf16>
    %c0_6 = arith.constant 0 : index
    %c0_7 = arith.constant 0 : index
    %9 = vector.load %arg4[%c0_6, %c0_7] : memref<128x8xbf16, #tpu.memory_space<vmem>>, vector<128x8xbf16>
    %cst_8 = arith.constant dense<0.000000e+00> : vector<16x8xf32>
    %10 = tpu.matmul %8, %9, %cst_8 {dimension_numbers = #tpu.dot_dimension_numbers<[1], [0], [0], [1], [0, 0, 1, 1], [], []>} : vector<16x128xbf16>, vector<128x8xbf16>, vector<16x8xf32> -> vector<16x8xf32>
    %c0_9 = arith.constant 0 : index
    %c0_10 = arith.constant 0 : index
    %11 = vector.load %arg5[%c0_9, %c0_10] : memref<1x8xf32, #tpu.memory_space<vmem>>, vector<1x8xf32>
    %12 = vector.broadcast %11 : vector<1x8xf32> to vector<16x8xf32>
    %13 = arith.addf %10, %12 : vector<16x8xf32>
    %14 = vector.extract_strided_slice %13 {offsets = [0, 0], sizes = [16, 2], strides = [1, 1]} : vector<16x8xf32> to vector<16x2xf32>
    %cst_11 = arith.constant dense<0xFF800000> : vector<16xf32>
    %15 = vector.multi_reduction <maximumf>, %14, %cst_11 [1] : vector<16x2xf32> to vector<16xf32>
    %16 = vector.shape_cast %15 : vector<16xf32> to vector<16x1xf32>
    %17 = vector.broadcast %16 : vector<16x1xf32> to vector<16x2xf32>
    %18 = arith.subf %14, %17 : vector<16x2xf32>
    %19 = math.exp %18 : vector<16x2xf32>
    %cst_12 = arith.constant dense<0.000000e+00> : vector<16xf32>
    %20 = vector.multi_reduction <add>, %19, %cst_12 [1] : vector<16x2xf32> to vector<16xf32>
    %21 = vector.shape_cast %20 : vector<16xf32> to vector<16x1xf32>
    %22 = tpu.reciprocal %21 {approx = true} : vector<16x1xf32> -> vector<16x1xf32>
    %23 = vector.broadcast %22 : vector<16x1xf32> to vector<16x2xf32>
    %24 = arith.mulf %19, %23 : vector<16x2xf32>
    %25 = vector.extract_strided_slice %13 {offsets = [0, 2], sizes = [16, 2], strides = [1, 1]} : vector<16x8xf32> to vector<16x2xf32>
    %cst_13 = arith.constant dense<0xFF800000> : vector<16xf32>
    %26 = vector.multi_reduction <maximumf>, %25, %cst_13 [1] : vector<16x2xf32> to vector<16xf32>
    %27 = vector.shape_cast %26 : vector<16xf32> to vector<16x1xf32>
    %28 = vector.broadcast %27 : vector<16x1xf32> to vector<16x2xf32>
    %29 = arith.subf %25, %28 : vector<16x2xf32>
    %30 = math.exp %29 : vector<16x2xf32>
    %cst_14 = arith.constant dense<0.000000e+00> : vector<16xf32>
    %31 = vector.multi_reduction <add>, %30, %cst_14 [1] : vector<16x2xf32> to vector<16xf32>
    %32 = vector.shape_cast %31 : vector<16xf32> to vector<16x1xf32>
    %33 = tpu.reciprocal %32 {approx = true} : vector<16x1xf32> -> vector<16x1xf32>
    %34 = vector.broadcast %33 : vector<16x1xf32> to vector<16x2xf32>
    %35 = arith.mulf %30, %34 : vector<16x2xf32>
    %36 = vector.extract_strided_slice %13 {offsets = [0, 4], sizes = [16, 4], strides = [1, 1]} : vector<16x8xf32> to vector<16x4xf32>
    %37 = tpu.concatenate %24, %35, %36 in 1 : vector<16x2xf32>, vector<16x2xf32>, vector<16x4xf32> -> vector<16x8xf32>
    %c0_15 = arith.constant 0 : index
    %c0_16 = arith.constant 0 : index
    %38 = vector.load %arg6[%c0_15, %c0_16] : memref<16x8xf32, #tpu.memory_space<vmem>>, vector<16x8xf32>
    tpu.vector_store %arg6[%c0_15, %c0_16], %37 {strides = array<i32>} : memref<16x8xf32, #tpu.memory_space<vmem>>, vector<16x8xf32>,
    return
  }
  func.func @transform_0(%arg0: i32) -> (i32, i32) {
    %c0_i32 = arith.constant 0 : i32
    %c0_i32_0 = arith.constant 0 : i32
    return %arg0, %c0_i32 : i32, i32
  }
  func.func @transform_1(%arg0: i32) -> (i32, i32) {
    %c0_i32 = arith.constant 0 : i32
    %c0_i32_0 = arith.constant 0 : i32
    %c0_i32_1 = arith.constant 0 : i32
    return %c0_i32, %c0_i32_0 : i32, i32
  }
  func.func @transform_2(%arg0: i32) -> (i32, i32) {
    %c0_i32 = arith.constant 0 : i32
    %c0_i32_0 = arith.constant 0 : i32
    %c0_i32_1 = arith.constant 0 : i32
    return %c0_i32, %c0_i32_0 : i32, i32
  }
  func.func @transform_3(%arg0: i32) -> (i32, i32) {
    %c0_i32 = arith.constant 0 : i32
    %c0_i32_0 = arith.constant 0 : i32
    %c0_i32_1 = arith.constant 0 : i32
    return %c0_i32, %c0_i32_0 : i32, i32
  }
  func.func @transform_4(%arg0: i32) -> (i32, i32) {
    %c0_i32 = arith.constant 0 : i32
    %c0_i32_0 = arith.constant 0 : i32
    %c0_i32_1 = arith.constant 0 : i32
    return %c0_i32, %c0_i32_0 : i32, i32
  }
  func.func @transform_5(%arg0: i32) -> (i32, i32) {
    %c0_i32 = arith.constant 0 : i32
    %c0_i32_0 = arith.constant 0 : i32
    return %arg0, %c0_i32 : i32, i32
  }
}

</mosaic_0001>

<bundles_post_ra>
// kernel: pcn1_forward.4
= control target key start
LH: loop header
LB: loop body
LE: loop exit
PB: predicated region body
PF: predicated region fallthrough
CT: control target
= control target key end

     0   :  { %vm198_vm0 = vcmask 1044480   ;;  %vm199_vm1 = vcmask 1045504   ;;  %vm149_vm2 = vcmask 220160   ;;  %v739_v1 = vmov 65535   ;;  %s995_s1 = inlined_call_operand.vmem [shape: bf16[27,16], index: 1, kind: input, shape index: {}]   ;;  %s996_s0 = inlined_call_operand.vmem [shape: bf16[256,27], index: 0, kind: input, shape index: {}]   ;;  %s997_s2 = inlined_call_operand.vmem [shape: f32[1,16], index: 2, kind: input, shape index: {}]   ;;  %s998_s3 = inlined_call_operand.vmem [shape: bf16[256,16], index: 3, kind: output, shape index: {}]  }
   0x1   :  { %v721_v0 = vld [vmem:[%s995_s1] sm:$0xff]   ;;  %v200_v2 = vsel %vm198_vm0, 4294967295, %v739_v1  ;;  %v722_v3 = vld [vmem:[%s995_s1 + $0x8] sm:$0x3f]   ;;  %v727_v10 = vld [vmem:[%s996_s0 + $0x10] sm:$0xff]   ;;  %vm526_vm3 = vcmask 125952  }
   0x2   :  { %680 = vmatprep.subr.bf16.mxu0 %v721_v0  ;;  %716 = vmatprep.subr.bf16.mxu1 %v721_v0  ;;  %v201_v4 = vsel %vm199_vm1, %v200_v2, 0  ;;  %v723_v5 = vld [vmem:[%s996_s0] sm:$0xff]   ;;  %v725_v8 = vld [vmem:[%s996_s0 + $0x8] sm:$0xff]   ;;  %v728_v11 = vld [vmem:[%s996_s0 + $0x50] sm:$0xff]  }
   0x3   :  { %681 = vmatpush3.bf16.msra.mxu0 %v721_v0  ;;  %718 = vmatpush3.bf16.msra.mxu1 %v721_v0  ;;  %v203_v6 = vand.u32 %v722_v3, %v201_v4  ;;  %v724_v7 = vld [vmem:[%s996_s0 + $0x40] sm:$0xff]   ;;  %v726_v9 = vld [vmem:[%s996_s0 + $0x48] sm:$0xff]   ;;  %v729_v12 = vld [vmem:[%s996_s0 + $0x18] sm:$0xff]  }
   0x4   :  { %684 = vmatprep.mubr.msk.bf16.mxu0 %vm149_vm2, %v723_v5  ;;  %700 = vmatprep.mubr.msk.bf16.mxu1 %vm149_vm2, %v724_v7  ;;  %v730_v13 = vld [vmem:[%s996_s0 + $0x58] sm:$0xff]   ;;  %v731_v14 = vld [vmem:[%s996_s0 + $0x20] sm:$0xff]   ;;  %v733_v16 = vld [vmem:[%s996_s0 + $0x28] sm:$0xff]  }
   0x5   :  { %682 = vmatprep.subr.bf16.mxu0 %v203_v6  ;;  %717 = vmatprep.subr.bf16.mxu1 %v203_v6  ;;  %v732_v15 = vld [vmem:[%s996_s0 + $0x60] sm:$0xff]   ;;  %v734_v17 = vld [vmem:[%s996_s0 + $0x68] sm:$0xff]   ;;  %v735_v18 = vld [vmem:[%s996_s0 + $0x30] sm:$0xff]  }
   0x6   :  { %v736_v19 = vld [vmem:[%s996_s0 + $0x70] sm:$0xff]   ;;  %v737_v20 = vld [vmem:[%s996_s0 + $0x38] sm:$0xff]   ;;  %v833_v22 = vld [vmem:[%s997_s2] ss:$0 sm:$0xff] }
   0x7   :  { %683 = vmatpush3.bf16.msra.mxu0 %v203_v6  ;;  %719 = vmatpush3.bf16.msra.mxu1 %v203_v6  ;;  %v738_v21 = vld [vmem:[%s996_s0 + $0x78] sm:$0xff]  }
   0xa   :  { %685 = vmatmul.mubr.msk.bf16.vlgmr.msra.gmra.mrb[0].mxu0 %vm149_vm2, %v725_v8  ;;  %701 = vmatmul.mubr.msk.bf16.vlgmr.msra.gmra.mrb[0].mxu1 %vm149_vm2, %v726_v9 }
   0xb   :  { %688 = vmatprep.mubr.msk.bf16.mxu0 %vm149_vm2, %v727_v10  ;;  %704 = vmatprep.mubr.msk.bf16.mxu1 %vm149_vm2, %v728_v11 }
  0x12   :  { %689 = vmatmul.mubr.msk.bf16.gmra.mrb[4].mxu0 %vm149_vm2, %v729_v12  ;;  %705 = vmatmul.mubr.msk.bf16.gmra.mrb[4].mxu1 %vm149_vm2, %v730_v13 }
  0x13   :  { %692 = vmatprep.mubr.msk.bf16.mxu0 %vm149_vm2, %v731_v14  ;;  %708 = vmatprep.mubr.msk.bf16.mxu1 %vm149_vm2, %v732_v15 }
  0x1a   :  { %693 = vmatmul.mubr.msk.bf16.gmra.mrb[8].mxu0 %vm149_vm2, %v733_v16  ;;  %709 = vmatmul.mubr.msk.bf16.gmra.mrb[8].mxu1 %vm149_vm2, %v734_v17 }
  0x1b   :  { %696 = vmatprep.mubr.msk.bf16.mxu0 %vm149_vm2, %v735_v18  ;;  %712 = vmatprep.mubr.msk.bf16.mxu1 %vm149_vm2, %v736_v19 }
  0x22   :  { %697 = vmatmul.mubr.msk.bf16.gmra.mrb[12].mxu0 %vm149_vm2, %v737_v20  ;;  %713 = vmatmul.mubr.msk.bf16.gmra.mrb[12].mxu1 %vm149_vm2, %v738_v21 }
  0xdd   :  { %v686_v23 = vpop.f32.mrb[0].mxu0  ;;  %v702_v24 = vpop.f32.mrb[0].mxu1 }
  0xde   :  { %v248_v25 = vadd.f32 %v686_v23, %v833_v22  ;;  %v312_v26 = vadd.f32 %v702_v24, %v833_v22  ;;  %v239_v27 = vpop.f32.mrb[1].mxu0  ;;  %v303_v28 = vpop.f32.mrb[1].mxu1 }
  0xdf   :  { %v240_v29 = vadd.f32 %v833_v22, %v239_v27  ;;  %v304_v30 = vadd.f32 %v833_v22, %v303_v28  ;;  %v687_v31 = vpop.f32.mrb[2].mxu0  ;;  %v703_v32 = vpop.f32.mrb[2].mxu1 }
  0xe0   :  { %v368_v33 = vmax.f32 %v248_v25, 0.0  ;;  %v384_v34 = vmax.f32 %v312_v26, 0.0  ;;  %v251_v35 = vadd.f32 %v687_v31, %v833_v22  ;;  %v315_v36 = vadd.f32 %v703_v32, %v833_v22  ;;  %v242_v37 = vpop.f32.mrb[3].mxu0  ;;  %v306_v38 = vpop.f32.mrb[3].mxu1 }
  0xe1   :  { %v366_v39 = vmax.f32 %v240_v29, 0.0  ;;  %v382_v40 = vmax.f32 %v304_v30, 0.0  ;;  %v243_v41 = vadd.f32 %v833_v22, %v242_v37  ;;  %v307_v42 = vadd.f32 %v833_v22, %v306_v38 }
  0xe2   :  { %v632_v43 = vpack.c.bf16 %v368_v33, %v368_v33  ;;  %v648_v44 = vpack.c.bf16 %v384_v34, %v384_v34  ;;  %v369_v45 = vmax.f32 %v251_v35, 0.0  ;;  %v385_v46 = vmax.f32 %v315_v36, 0.0 }
  0xe3   :  { %v630_v47 = vpack.c.bf16 %v366_v39, %v366_v39  ;;  %v646_v48 = vpack.c.bf16 %v382_v40, %v382_v40  ;;  %v367_v49 = vmax.f32 %v243_v41, 0.0  ;;  %v383_v50 = vmax.f32 %v307_v42, 0.0 }
  0xe4   :  { %529 = vst.msk [vmem:[%s998_s3 + $0x8] sm:$0xf] %vm526_vm3, %v632_v43  ;;  %545 = vst.msk [vmem:[%s998_s3 + $0x48] sm:$0xf] %vm526_vm3, %v648_v44  ;;  %v633_v51 = vpack.c.bf16 %v369_v45, %v369_v45  ;;  %v649_v52 = vpack.c.bf16 %v385_v46, %v385_v46 }
  0xe5   :  { %527 = vst.msk [vmem:[%s998_s3] sm:$0xf] %vm526_vm3, %v630_v47  ;;  %543 = vst.msk [vmem:[%s998_s3 + $0x40] sm:$0xf] %vm526_vm3, %v646_v48  ;;  %v631_v53 = vpack.c.bf16 %v367_v49, %v367_v49  ;;  %v647_v54 = vpack.c.bf16 %v383_v50, %v383_v50  ;;  %v690_v55 = vpop.f32.mrb[4].mxu0  ;;  %v706_v56 = vpop.f32.mrb[4].mxu1 }
  0xe6   :  { %530 = vst.msk [vmem:[%s998_s3 + $0xc] sm:$0xf] %vm526_vm3, %v633_v51  ;;  %546 = vst.msk [vmem:[%s998_s3 + $0x4c] sm:$0xf] %vm526_vm3, %v649_v52  ;;  %v264_v57 = vadd.f32 %v690_v55, %v833_v22  ;;  %v328_v58 = vadd.f32 %v706_v56, %v833_v22  ;;  %v255_v59 = vpop.f32.mrb[5].mxu0  ;;  %v319_v60 = vpop.f32.mrb[5].mxu1 }
  0xe7   :  { %528 = vst.msk [vmem:[%s998_s3 + $0x4] sm:$0xf] %vm526_vm3, %v631_v53  ;;  %544 = vst.msk [vmem:[%s998_s3 + $0x44] sm:$0xf] %vm526_vm3, %v647_v54  ;;  %v256_v61 = vadd.f32 %v833_v22, %v255_v59  ;;  %v320_v62 = vadd.f32 %v833_v22, %v319_v60  ;;  %v691_v63 = vpop.f32.mrb[6].mxu0  ;;  %v707_v0 = vpop.f32.mrb[6].mxu1 }
  0xe8   :  { %v372_v1 = vmax.f32 %v264_v57, 0.0  ;;  %v388_v2 = vmax.f32 %v328_v58, 0.0  ;;  %v267_v3 = vadd.f32 %v691_v63, %v833_v22  ;;  %v331_v4 = vadd.f32 %v707_v0, %v833_v22  ;;  %v258_v5 = vpop.f32.mrb[7].mxu0  ;;  %v322_v6 = vpop.f32.mrb[7].mxu1 }
  0xe9   :  { %v370_v7 = vmax.f32 %v256_v61, 0.0  ;;  %v386_v8 = vmax.f32 %v320_v62, 0.0  ;;  %v259_v9 = vadd.f32 %v833_v22, %v258_v5  ;;  %v323_v10 = vadd.f32 %v833_v22, %v322_v6 }
  0xea   :  { %v636_v11 = vpack.c.bf16 %v372_v1, %v372_v1  ;;  %v652_v12 = vpack.c.bf16 %v388_v2, %v388_v2  ;;  %v373_v13 = vmax.f32 %v267_v3, 0.0  ;;  %v389_v14 = vmax.f32 %v331_v4, 0.0 }
  0xeb   :  { %v634_v15 = vpack.c.bf16 %v370_v7, %v370_v7  ;;  %v650_v16 = vpack.c.bf16 %v386_v8, %v386_v8  ;;  %v371_v17 = vmax.f32 %v259_v9, 0.0  ;;  %v387_v18 = vmax.f32 %v323_v10, 0.0 }
  0xec   :  { %533 = vst.msk [vmem:[%s998_s3 + $0x18] sm:$0xf] %vm526_vm3, %v636_v11  ;;  %549 = vst.msk [vmem:[%s998_s3 + $0x58] sm:$0xf] %vm526_vm3, %v652_v12  ;;  %v637_v19 = vpack.c.bf16 %v373_v13, %v373_v13  ;;  %v653_v20 = vpack.c.bf16 %v389_v14, %v389_v14 }
  0xed   :  { %531 = vst.msk [vmem:[%s998_s3 + $0x10] sm:$0xf] %vm526_vm3, %v634_v15  ;;  %547 = vst.msk [vmem:[%s998_s3 + $0x50] sm:$0xf] %vm526_vm3, %v650_v16  ;;  %v635_v21 = vpack.c.bf16 %v371_v17, %v371_v17  ;;  %v651_v23 = vpack.c.bf16 %v387_v18, %v387_v18  ;;  %v694_v24 = vpop.f32.mrb[8].mxu0  ;;  %v710_v25 = vpop.f32.mrb[8].mxu1 }
  0xee   :  { %534 = vst.msk [vmem:[%s998_s3 + $0x1c] sm:$0xf] %vm526_vm3, %v637_v19  ;;  %550 = vst.msk [vmem:[%s998_s3 + $0x5c] sm:$0xf] %vm526_vm3, %v653_v20  ;;  %v280_v26 = vadd.f32 %v694_v24, %v833_v22  ;;  %v344_v27 = vadd.f32 %v710_v25, %v833_v22  ;;  %v271_v28 = vpop.f32.mrb[9].mxu0  ;;  %v335_v29 = vpop.f32.mrb[9].mxu1 }
  0xef   :  { %532 = vst.msk [vmem:[%s998_s3 + $0x14] sm:$0xf] %vm526_vm3, %v635_v21  ;;  %548 = vst.msk [vmem:[%s998_s3 + $0x54] sm:$0xf] %vm526_vm3, %v651_v23  ;;  %v272_v30 = vadd.f32 %v833_v22, %v271_v28  ;;  %v336_v31 = vadd.f32 %v833_v22, %v335_v29  ;;  %v695_v32 = vpop.f32.mrb[10].mxu0  ;;  %v711_v33 = vpop.f32.mrb[10].mxu1 }
  0xf0   :  { %v376_v34 = vmax.f32 %v280_v26, 0.0  ;;  %v392_v35 = vmax.f32 %v344_v27, 0.0  ;;  %v283_v36 = vadd.f32 %v695_v32, %v833_v22  ;;  %v347_v37 = vadd.f32 %v711_v33, %v833_v22  ;;  %v274_v38 = vpop.f32.mrb[11].mxu0  ;;  %v338_v39 = vpop.f32.mrb[11].mxu1 }
  0xf1   :  { %v374_v40 = vmax.f32 %v272_v30, 0.0  ;;  %v390_v41 = vmax.f32 %v336_v31, 0.0  ;;  %v275_v42 = vadd.f32 %v833_v22, %v274_v38  ;;  %v339_v43 = vadd.f32 %v833_v22, %v338_v39 }
  0xf2   :  { %v640_v44 = vpack.c.bf16 %v376_v34, %v376_v34  ;;  %v656_v45 = vpack.c.bf16 %v392_v35, %v392_v35  ;;  %v377_v46 = vmax.f32 %v283_v36, 0.0  ;;  %v393_v47 = vmax.f32 %v347_v37, 0.0 }
  0xf3   :  { %v638_v48 = vpack.c.bf16 %v374_v40, %v374_v40  ;;  %v654_v49 = vpack.c.bf16 %v390_v41, %v390_v41  ;;  %v375_v50 = vmax.f32 %v275_v42, 0.0  ;;  %v391_v51 = vmax.f32 %v339_v43, 0.0 }
  0xf4   :  { %537 = vst.msk [vmem:[%s998_s3 + $0x28] sm:$0xf] %vm526_vm3, %v640_v44  ;;  %553 = vst.msk [vmem:[%s998_s3 + $0x68] sm:$0xf] %vm526_vm3, %v656_v45  ;;  %v641_v52 = vpack.c.bf16 %v377_v46, %v377_v46  ;;  %v657_v53 = vpack.c.bf16 %v393_v47, %v393_v47 }
  0xf5   :  { %535 = vst.msk [vmem:[%s998_s3 + $0x20] sm:$0xf] %vm526_vm3, %v638_v48  ;;  %551 = vst.msk [vmem:[%s998_s3 + $0x60] sm:$0xf] %vm526_vm3, %v654_v49  ;;  %v639_v54 = vpack.c.bf16 %v375_v50, %v375_v50  ;;  %v655_v55 = vpack.c.bf16 %v391_v51, %v391_v51  ;;  %v698_v56 = vpop.f32.mrb[12].mxu0  ;;  %v714_v57 = vpop.f32.mrb[12].mxu1 }
  0xf6   :  { %538 = vst.msk [vmem:[%s998_s3 + $0x2c] sm:$0xf] %vm526_vm3, %v641_v52  ;;  %554 = vst.msk [vmem:[%s998_s3 + $0x6c] sm:$0xf] %vm526_vm3, %v657_v53  ;;  %v296_v58 = vadd.f32 %v698_v56, %v833_v22  ;;  %v360_v59 = vadd.f32 %v714_v57, %v833_v22  ;;  %v287_v60 = vpop.f32.mrb[13].mxu0  ;;  %v351_v61 = vpop.f32.mrb[13].mxu1 }
  0xf7   :  { %536 = vst.msk [vmem:[%s998_s3 + $0x24] sm:$0xf] %vm526_vm3, %v639_v54  ;;  %552 = vst.msk [vmem:[%s998_s3 + $0x64] sm:$0xf] %vm526_vm3, %v655_v55  ;;  %v288_v62 = vadd.f32 %v833_v22, %v287_v60  ;;  %v352_v63 = vadd.f32 %v833_v22, %v351_v61  ;;  %v699_v0 = vpop.f32.mrb[14].mxu0  ;;  %v715_v1 = vpop.f32.mrb[14].mxu1 }
  0xf8   :  { %v380_v2 = vmax.f32 %v296_v58, 0.0  ;;  %v396_v3 = vmax.f32 %v360_v59, 0.0  ;;  %v299_v4 = vadd.f32 %v699_v0, %v833_v22  ;;  %v363_v5 = vadd.f32 %v715_v1, %v833_v22  ;;  %v290_v6 = vpop.f32.mrb[15].mxu0  ;;  %v354_v7 = vpop.f32.mrb[15].mxu1 }
  0xf9   :  { %v378_v8 = vmax.f32 %v288_v62, 0.0  ;;  %v394_v9 = vmax.f32 %v352_v63, 0.0  ;;  %v291_v10 = vadd.f32 %v833_v22, %v290_v6  ;;  %v355_v11 = vadd.f32 %v833_v22, %v354_v7 }
  0xfa   :  { %v644_v12 = vpack.c.bf16 %v380_v2, %v380_v2  ;;  %v660_v13 = vpack.c.bf16 %v396_v3, %v396_v3  ;;  %v381_v14 = vmax.f32 %v299_v4, 0.0  ;;  %v397_v15 = vmax.f32 %v363_v5, 0.0 }
  0xfb   :  { %v642_v16 = vpack.c.bf16 %v378_v8, %v378_v8  ;;  %v658_v17 = vpack.c.bf16 %v394_v9, %v394_v9  ;;  %v379_v18 = vmax.f32 %v291_v10, 0.0  ;;  %v395_v19 = vmax.f32 %v355_v11, 0.0 }
  0xfc   :  { %541 = vst.msk [vmem:[%s998_s3 + $0x38] sm:$0xf] %vm526_vm3, %v644_v12  ;;  %557 = vst.msk [vmem:[%s998_s3 + $0x78] sm:$0xf] %vm526_vm3, %v660_v13  ;;  %v645_v20 = vpack.c.bf16 %v381_v14, %v381_v14  ;;  %v661_v22 = vpack.c.bf16 %v397_v15, %v397_v15 }
  0xfd   :  { %539 = vst.msk [vmem:[%s998_s3 + $0x30] sm:$0xf] %vm526_vm3, %v642_v16  ;;  %555 = vst.msk [vmem:[%s998_s3 + $0x70] sm:$0xf] %vm526_vm3, %v658_v17  ;;  %v643_v21 = vpack.c.bf16 %v379_v18, %v379_v18  ;;  %v659_v23 = vpack.c.bf16 %v395_v19, %v395_v19 }
  0xfe   :  { %542 = vst.msk [vmem:[%s998_s3 + $0x3c] sm:$0xf] %vm526_vm3, %v645_v20  ;;  %558 = vst.msk [vmem:[%s998_s3 + $0x7c] sm:$0xf] %vm526_vm3, %v661_v22 }
  0xff   :  { %540 = vst.msk [vmem:[%s998_s3 + $0x34] sm:$0xf] %vm526_vm3, %v643_v21  ;;  %556 = vst.msk [vmem:[%s998_s3 + $0x74] sm:$0xf] %vm526_vm3, %v659_v23 }

// kernel: pcn1_forward.5
= control target key start
LH: loop header
LB: loop body
LE: loop exit
PB: predicated region body
PF: predicated region fallthrough
CT: control target
= control target key end

     0   :  { %v347_v0 = vmov 0   ;;  %vm138_vm0 = vcmask 130048   ;;  %vm256_vm1 = vcmask 257024   ;;  %s458_s1 = inlined_call_operand.vmem [shape: bf16[144,32], index: 1, kind: input, shape index: {}]   ;;  %s459_s0 = inlined_call_operand.vmem [shape: bf16[64,144], index: 0, kind: input, shape index: {}]   ;;  %s460_s2 = inlined_call_operand.vmem [shape: f32[1,32], index: 2, kind: input, shape index: {}]   ;;  %s461_s3 = inlined_call_operand.vmem [shape: bf16[64,32], index: 3, kind: output, shape index: {}]  }
   0x1   :  { %151 = vmatprep.subr.bf16.mxu0 %v347_v0  ;;  %307 = vmatprep.subr.bf16.mxu1 %v347_v0  ;;  %v326_v1 = vld [vmem:[%s458_s1] sm:$0xff]   ;;  %v327_v2 = vld [vmem:[%s458_s1 + $0x8] sm:$0xff]   ;;  %v328_v3 = vld [vmem:[%s458_s1 + $0x10] sm:$0xff]  }
   0x2   :  { %152 = vmatpush1.bf16.msra.mxu0 %v326_v1  ;;  %316 = vmatpush1.bf16.msra.mxu1 %v326_v1  ;;  %v329_v4 = vld [vmem:[%s458_s1 + $0x18] sm:$0xff]   ;;  %v337_v5 = vld [vmem:[%s459_s0 + $0x4] ss:$8 sps:$4 sm:$0xff]   ;;  %v332_v9 = vld [vmem:[%s458_s1 + $0x30] sm:$0xff]  }
   0x3   :  { %153 = vmatprep.subr.bf16.mxu0 %v347_v0  ;;  %308 = vmatprep.subr.bf16.mxu1 %v347_v0  ;;  %v340_v6 = vld [vmem:[%s459_s0 + $0x24] ss:$8 sps:$4 sm:$0xff]   ;;  %v333_v10 = vld [vmem:[%s458_s1 + $0x38] sm:$0xff]   ;;  %v335_v12 = vld [vmem:[%s459_s0] ss:$8 sps:$4 sm:$0xff]  }
   0x4   :  { %287 = vmatprep.mubr.msk.bf16.mxu0 %vm138_vm0, %v337_v5  ;;  %289 = vmatprep.mubr.msk.bf16.mxu1 %vm138_vm0, %v340_v6  ;;  %v330_v7 = vld [vmem:[%s458_s1 + $0x20] sm:$0xff]   ;;  %v331_v8 = vld [vmem:[%s458_s1 + $0x28] sm:$0xff]   ;;  %v341_v14 = vld [vmem:[%s459_s0 + $0x14] ss:$8 sps:$4 sm:$0xff]  }
   0x5   :  { %v334_v11 = vld [vmem:[%s458_s1 + $0x40] sm:$0xff]   ;;  %v343_v15 = vld [vmem:[%s459_s0 + $0x34] ss:$8 sps:$4 sm:$0xff]   ;;  %v345_v16 = vld [vmem:[%s459_s0 + $0x10] ss:$8 sps:$4 sm:$0xff]  }
   0x6   :  { %154 = vmatpush1.bf16.msra.mxu0 %v327_v2  ;;  %317 = vmatpush1.bf16.msra.mxu1 %v327_v2  ;;  %v338_v13 = vld [vmem:[%s459_s0 + $0x20] ss:$8 sps:$4 sm:$0xff]   ;;  %v346_v17 = vld [vmem:[%s459_s0 + $0x30] ss:$8 sps:$4 sm:$0xff]  }
   0x7   :  { %155 = vmatprep.subr.bf16.mxu0 %v347_v0  ;;  %309 = vmatprep.subr.bf16.mxu1 %v347_v0  ;;  %v269_v18 = vld [vmem:[%s460_s2] ss:$0 sm:$0xff] }
   0xa   :  { %156 = vmatpush1.bf16.msra.mxu0 %v328_v3  ;;  %318 = vmatpush1.bf16.msra.mxu1 %v328_v3 }
   0xb   :  { %157 = vmatprep.subr.bf16.mxu0 %v347_v0  ;;  %310 = vmatprep.subr.bf16.mxu1 %v347_v0 }
   0xe   :  { %158 = vmatpush1.bf16.msra.mxu0 %v329_v4  ;;  %319 = vmatpush1.bf16.msra.mxu1 %v329_v4 }
   0xf   :  { %159 = vmatprep.subr.bf16.mxu0 %v347_v0  ;;  %311 = vmatprep.subr.bf16.mxu1 %v347_v0 }
  0x12   :  { %160 = vmatpush1.bf16.msra.mxu0 %v330_v7  ;;  %320 = vmatpush1.bf16.msra.mxu1 %v330_v7 }
  0x13   :  { %161 = vmatprep.subr.bf16.mxu0 %v347_v0  ;;  %312 = vmatprep.subr.bf16.mxu1 %v347_v0 }
  0x16   :  { %162 = vmatpush1.bf16.msra.mxu0 %v331_v8  ;;  %321 = vmatpush1.bf16.msra.mxu1 %v331_v8 }
  0x17   :  { %163 = vmatprep.subr.bf16.mxu0 %v347_v0  ;;  %313 = vmatprep.subr.bf16.mxu1 %v347_v0 }
  0x1a   :  { %164 = vmatpush1.bf16.msra.mxu0 %v332_v9  ;;  %322 = vmatpush1.bf16.msra.mxu1 %v332_v9 }
  0x1b   :  { %165 = vmatprep.subr.bf16.mxu0 %v347_v0  ;;  %314 = vmatprep.subr.bf16.mxu1 %v347_v0 }
  0x1e   :  { %166 = vmatpush1.bf16.msra.mxu0 %v333_v10  ;;  %323 = vmatpush1.bf16.msra.mxu1 %v333_v10 }
  0x1f   :  { %167 = vmatprep.subr.bf16.mxu0 %v347_v0  ;;  %315 = vmatprep.subr.bf16.mxu1 %v347_v0 }
  0x22   :  { %168 = vmatpush1.bf16.msra.mxu0 %v334_v11  ;;  %324 = vmatpush1.bf16.msra.mxu1 %v334_v11 }
  0x25   :  { %184 = vmatmul.mubr.bf16.vlgmr.msra.gmra.mrb[0].mxu0 %v335_v12  ;;  %200 = vmatmul.mubr.bf16.vlgmr.msra.gmra.mrb[0].mxu1 %v338_v13 }
  0x26   :  { %288 = vmatprep.mubr.msk.bf16.mxu0 %vm138_vm0, %v341_v14  ;;  %290 = vmatprep.mubr.msk.bf16.mxu1 %vm138_vm0, %v343_v15 }
  0x2d   :  { %192 = vmatmul.mubr.bf16.gmra.mrb[4].mxu0 %v345_v16  ;;  %208 = vmatmul.mubr.bf16.gmra.mrb[4].mxu1 %v346_v17 }
  0xf8   :  { %v185_v19 = vpop.f32.mrb[0].mxu0  ;;  %v201_v20 = vpop.f32.mrb[0].mxu1 }
  0xf9   :  { %v186_v21 = vadd.f32 %v269_v18, %v185_v19  ;;  %v202_v22 = vadd.f32 %v269_v18, %v201_v20  ;;  %v187_v23 = vpop.f32.mrb[1].mxu0  ;;  %v203_v24 = vpop.f32.mrb[1].mxu1 }
  0xfa   :  { %v188_v25 = vpop.f32.mrb[2].mxu0  ;;  %v204_v26 = vpop.f32.mrb[2].mxu1 }
  0xfb   :  { %v216_v27 = vmax.f32 %v186_v21, 0.0  ;;  %v220_v28 = vmax.f32 %v202_v22, 0.0  ;;  %v189_v29 = vadd.f32 %v269_v18, %v188_v25  ;;  %v205_v30 = vadd.f32 %v269_v18, %v204_v26  ;;  %v190_v31 = vpop.f32.mrb[3].mxu0  ;;  %v206_v32 = vpop.f32.mrb[3].mxu1 }
  0xfd   :  { %v299_v33 = vpack.c.bf16 %v216_v27, %v216_v27  ;;  %v303_v34 = vpack.c.bf16 %v220_v28, %v220_v28  ;;  %v217_v35 = vmax.f32 %v189_v29, 0.0  ;;  %v221_v36 = vmax.f32 %v205_v30, 0.0 }
  0xff   :  { %257 = vst.msk [vmem:[%s461_s3] sm:$0xf] %vm256_vm1, %v299_v33  ;;  %261 = vst.msk [vmem:[%s461_s3 + $0x10] sm:$0xf] %vm256_vm1, %v303_v34  ;;  %v300_v37 = vpack.c.bf16 %v217_v35, %v217_v35  ;;  %v304_v38 = vpack.c.bf16 %v221_v36, %v221_v36 }
 0x100   :  { %v193_v39 = vpop.f32.mrb[4].mxu0  ;;  %v209_v40 = vpop.f32.mrb[4].mxu1 }
 0x101   :  { %258 = vst.msk [vmem:[%s461_s3 + $0x4] sm:$0xf] %vm256_vm1, %v300_v37  ;;  %262 = vst.msk [vmem:[%s461_s3 + $0x14] sm:$0xf] %vm256_vm1, %v304_v38  ;;  %v194_v41 = vadd.f32 %v269_v18, %v193_v39  ;;  %v210_v42 = vadd.f32 %v269_v18, %v209_v40  ;;  %v195_v43 = vpop.f32.mrb[5].mxu0  ;;  %v211_v44 = vpop.f32.mrb[5].mxu1 }
 0x102   :  { %v196_v45 = vpop.f32.mrb[6].mxu0  ;;  %v212_v46 = vpop.f32.mrb[6].mxu1 }
 0x103   :  { %v218_v47 = vmax.f32 %v194_v41, 0.0  ;;  %v222_v48 = vmax.f32 %v210_v42, 0.0  ;;  %v197_v49 = vadd.f32 %v269_v18, %v196_v45  ;;  %v213_v50 = vadd.f32 %v269_v18, %v212_v46  ;;  %v198_v51 = vpop.f32.mrb[7].mxu0  ;;  %v214_v52 = vpop.f32.mrb[7].mxu1 }
 0x105   :  { %v301_v53 = vpack.c.bf16 %v218_v47, %v218_v47  ;;  %v305_v54 = vpack.c.bf16 %v222_v48, %v222_v48  ;;  %v219_v55 = vmax.f32 %v197_v49, 0.0  ;;  %v223_v56 = vmax.f32 %v213_v50, 0.0 }
 0x107   :  { %259 = vst.msk [vmem:[%s461_s3 + $0x8] sm:$0xf] %vm256_vm1, %v301_v53  ;;  %263 = vst.msk [vmem:[%s461_s3 + $0x18] sm:$0xf] %vm256_vm1, %v305_v54  ;;  %v302_v57 = vpack.c.bf16 %v219_v55, %v219_v55  ;;  %v306_v58 = vpack.c.bf16 %v223_v56, %v223_v56 }
 0x109   :  { %260 = vst.msk [vmem:[%s461_s3 + $0xc] sm:$0xf] %vm256_vm1, %v302_v57  ;;  %264 = vst.msk [vmem:[%s461_s3 + $0x1c] sm:$0xf] %vm256_vm1, %v306_v58 }

// kernel: pcn1_forward.6
= control target key start
LH: loop header
LB: loop body
LE: loop exit
PB: predicated region body
PF: predicated region fallthrough
CT: control target
= control target key end

     0   :  { %v372_v1 = vmov 0.0   ;;  %vm373_vm0 = vmmov 0   ;;  %vm185_vm1 = vcmask 261120   ;;  %vm281_vm2 = vcmask 519168   ;;  %s466_s1 = inlined_call_operand.vmem [shape: bf16[288,64], index: 1, kind: input, shape index: {}]   ;;  %s467_s0 = inlined_call_operand.vmem [shape: bf16[16,288], index: 0, kind: input, shape index: {}]   ;;  %s468_s2 = inlined_call_operand.vmem [shape: f32[1,64], index: 2, kind: input, shape index: {}]   ;;  %s469_s3 = inlined_call_operand.vmem [shape: bf16[16,64], index: 3, kind: output, shape index: {}]  }
   0x1   :  { %v350_v0 = vld [vmem:[%s466_s1 + $0x40] sm:$0xff]   ;;  %340 = vmatprep.subr.bf16.mxu1 %v372_v1  ;;  %344 = vmatprep.mubr.msk.bf16.mxu1 %vm373_vm0, %v372_v1  ;;  %v352_v3 = vld [vmem:[%s466_s1 + $0x48] sm:$0xff]   ;;  %v354_v5 = vld [vmem:[%s466_s1 + $0x50] sm:$0xff]  }
   0x2   :  { %v351_v2 = vld [vmem:[%s466_s1] sm:$0xff]   ;;  %315 = vmatprep.subr.bf16.mxu0 %v350_v0  ;;  %v353_v4 = vld [vmem:[%s466_s1 + $0x8] sm:$0xff]   ;;  %v355_v6 = vld [vmem:[%s466_s1 + $0x10] sm:$0xff]  }
   0x3   :  { %316 = vmatpush3.bf16.msra.mxu0 %v351_v2  ;;  %v356_v7 = vld [vmem:[%s466_s1 + $0x58] sm:$0xff]   ;;  %v358_v9 = vld [vmem:[%s466_s1 + $0x60] sm:$0xff]   ;;  %v360_v12 = vld [vmem:[%s466_s1 + $0x68] sm:$0xff]  }
   0x4   :  { %317 = vmatprep.subr.bf16.mxu0 %v352_v3  ;;  %v357_v8 = vld [vmem:[%s466_s1 + $0x18] sm:$0xff]   ;;  %v364_v10 = vld [vmem:[%s466_s1 + $0x80] sm:$0xff]   ;;  %v361_v13 = vld [vmem:[%s466_s1 + $0x28] sm:$0xff]  }
   0x5   :  { %v359_v11 = vld [vmem:[%s466_s1 + $0x20] sm:$0xff]   ;;  %341 = vmatpush3.bf16.msra.mxu1 %v364_v10  ;;  %v370_v15 = vld [vmem:[%s466_s1 + $0x88] sm:$0xff]   ;;  %v362_v16 = vld [vmem:[%s466_s1 + $0x70] sm:$0xff]  }
   0x6   :  { %342 = vmatprep.subr.bf16.mxu1 %v372_v1  ;;  %v369_v14 = vld [vmem:[%s467_s0 + $0x4] ss:$12 sps:$4 sm:$0xff]   ;;  %v371_v17 = vld [vmem:[%s467_s0 + $0x8] ss:$12 sps:$4 sm:$0xff]   ;;  %v365_v19 = vld [vmem:[%s466_s1 + $0x78] sm:$0xff]  }
   0x7   :  { %318 = vmatpush3.bf16.msra.mxu0 %v353_v4  ;;  %221 = vmatprep.mubr.bf16.mxu0 %v369_v14  ;;  %v363_v18 = vld [vmem:[%s466_s1 + $0x30] sm:$0xff]   ;;  %v366_v20 = vld [vmem:[%s466_s1 + $0x38] sm:$0xff]   ;;  %v367_v21 = vld [vmem:[%s467_s0] ss:$12 sps:$4 sm:$0xff]  }
   0x8   :  { %319 = vmatprep.subr.bf16.mxu0 %v354_v5  ;;  %v288_v28 = vld [vmem:[%s468_s2] ss:$0 sm:$0xff] }
   0x9   :  { %343 = vmatpush3.bf16.msra.mxu1 %v370_v15 }
   0xb   :  { %320 = vmatpush3.bf16.msra.mxu0 %v355_v6 }
   0xc   :  { %321 = vmatprep.subr.bf16.mxu0 %v356_v7  ;;  %345 = vmatmul.mubr.msk.bf16.vlgmr.msra.gmra.mrb[0].mxu1 %vm185_vm1, %v371_v17 }
   0xf   :  { %322 = vmatpush3.bf16.msra.mxu0 %v357_v8 }
  0x10   :  { %323 = vmatprep.subr.bf16.mxu0 %v358_v9 }
  0x13   :  { %324 = vmatpush3.bf16.msra.mxu0 %v359_v11 }
  0x14   :  { %325 = vmatprep.subr.bf16.mxu0 %v360_v12 }
  0x17   :  { %326 = vmatpush3.bf16.msra.mxu0 %v361_v13 }
  0x18   :  { %327 = vmatprep.subr.bf16.mxu0 %v362_v16 }
  0x1b   :  { %328 = vmatpush3.bf16.msra.mxu0 %v363_v18 }
  0x1c   :  { %329 = vmatprep.subr.bf16.mxu0 %v365_v19 }
  0x1f   :  { %330 = vmatpush3.bf16.msra.mxu0 %v366_v20 }
  0x22   :  { %222 = vmatmul.mubr.bf16.vlgmr.msra.gmra.mrb[0].mxu0 %v367_v21 }
  0xdf   :  { %v264_v22 = vpop.f32.mrb[0].mxu1 }
  0xe0   :  { %v346_v23 = vpop.f32.mrb[1].mxu1 }
  0xe1   :  { %v267_v24 = vpop.f32.mrb[2].mxu1 }
  0xe2   :  { %v347_v25 = vpop.f32.mrb[3].mxu1 }
  0xf5   :  { %v331_v26 = vpop.f32.mrb[0].mxu0 }
  0xf6   :  { %v332_v27 = vpop.f32.mrb[1].mxu0 }
  0xf7   :  { %v333_v29 = vadd.f32 %v332_v27, %v331_v26  ;;  %v334_v30 = vpop.f32.mrb[2].mxu0 }
  0xf8   :  { %v335_v31 = vpop.f32.mrb[3].mxu0 }
  0xf9   :  { %v224_v32 = vadd.f32 %v333_v29, %v288_v28  ;;  %v336_v33 = vadd.f32 %v335_v31, %v334_v30 }
  0xfb   :  { %v265_v34 = vadd.f32 %v264_v22, %v224_v32  ;;  %v227_v35 = vadd.f32 %v336_v33, %v288_v28 }
  0xfd   :  { %v271_v36 = vmax.f32 %v265_v34, 0.0  ;;  %v268_v37 = vadd.f32 %v267_v24, %v227_v35 }
  0xff   :  { %v313_v38 = vpack.c.bf16 %v271_v36, %v271_v36  ;;  %v272_v39 = vmax.f32 %v268_v37, 0.0 }
 0x101   :  { %282 = vst.msk [vmem:[%s469_s3] sm:$0xf] %vm281_vm2, %v313_v38  ;;  %v314_v40 = vpack.c.bf16 %v272_v39, %v272_v39 }
 0x103   :  { %283 = vst.msk [vmem:[%s469_s3 + $0x4] sm:$0xf] %vm281_vm2, %v314_v40 }

// kernel: pcn1_forward.7
= control target key start
LH: loop header
LB: loop body
LE: loop exit
PB: predicated region body
PF: predicated region fallthrough
CT: control target
= control target key end

     0   :  { %v515_v1 = vmov 0.0   ;;  %vm516_vm0 = vmmov 0   ;;  %vm347_vm1 = vcmask 31760   ;;  %vm324_vm2 = vcmask 15360   ;;  %s669_s1 = inlined_call_operand.vmem [shape: bf16[256,128], index: 1, kind: input, shape index: {}]   ;;  %s670_s0 = inlined_call_operand.vmem [shape: bf16[16,256], index: 0, kind: input, shape index: {}]   ;;  %s671_s3 = inlined_call_operand.vmem [shape: bf16[128,8], index: 3, kind: input, shape index: {}]   ;;  %s672_s2 = inlined_call_operand.vmem [shape: f32[1,128], index: 2, kind: input, shape index: {}]   ;;  %s673_s4 = inlined_call_operand.vmem [shape: f32[1,8], index: 4, kind: input, shape index: {}]   ;;  %s674_s5 = inlined_call_operand.vmem [shape: f32[16,8], index: 5, kind: output, shape index: {}]  }
   0x1   :  { %v472_v0 = vld [vmem:[%s669_s1 + $0x40] sm:$0xff]   ;;  %449 = vmatprep.subr.bf16.mxu1 %v515_v1  ;;  %v474_v3 = vld [vmem:[%s669_s1 + $0x48] sm:$0xff]   ;;  %v476_v5 = vld [vmem:[%s669_s1 + $0x50] sm:$0xff]   ;;  %465 = vmatprep.mubr.msk.bf16.mxu1 %vm516_vm0, %v515_v1  ;;  %vm380_vm3 = vcmask 31744   ;;  %vm383_vm4 = vcmask 64512  }
   0x2   :  { %v473_v2 = vld [vmem:[%s669_s1] sm:$0xff]   ;;  %418 = vmatprep.subr.bf16.mxu0 %v472_v0  ;;  %v475_v4 = vld [vmem:[%s669_s1 + $0x8] sm:$0xff]   ;;  %v477_v6 = vld [vmem:[%s669_s1 + $0x10] sm:$0xff]  }
   0x3   :  { %419 = vmatpush3.bf16.msra.mxu0 %v473_v2  ;;  %v478_v7 = vld [vmem:[%s669_s1 + $0x58] sm:$0xff]   ;;  %v480_v9 = vld [vmem:[%s669_s1 + $0x60] sm:$0xff]   ;;  %v482_v11 = vld [vmem:[%s669_s1 + $0x68] sm:$0xff]  }
   0x4   :  { %420 = vmatprep.subr.bf16.mxu0 %v474_v3  ;;  %v479_v8 = vld [vmem:[%s669_s1 + $0x18] sm:$0xff]   ;;  %v481_v10 = vld [vmem:[%s669_s1 + $0x20] sm:$0xff]   ;;  %v483_v12 = vld [vmem:[%s669_s1 + $0x28] sm:$0xff]  }
   0x5   :  { %v490_v13 = vld [vmem:[%s670_s0 + $0x4] ss:$8 sps:$4 sm:$0xff]   ;;  %v484_v15 = vld [vmem:[%s669_s1 + $0x70] sm:$0xff]   ;;  %v486_v18 = vld [vmem:[%s669_s1 + $0x78] sm:$0xff]  }
   0x6   :  { %v491_v14 = vld [vmem:[%s671_s3] sm:$0xff]   ;;  %200 = vmatprep.mubr.bf16.mxu0 %v490_v13  ;;  %v492_v16 = vld [vmem:[%s671_s3 + $0x8] sm:$0xff]   ;;  %v485_v17 = vld [vmem:[%s669_s1 + $0x30] sm:$0xff]  }
   0x7   :  { %421 = vmatpush3.bf16.msra.mxu0 %v475_v4  ;;  %450 = vmatpush3.bf16.msra.mxu1 %v491_v14  ;;  %v493_v19 = vld [vmem:[%s671_s3 + $0x10] sm:$0xff]   ;;  %v487_v20 = vld [vmem:[%s669_s1 + $0x38] sm:$0xff]   ;;  %v488_v22 = vld [vmem:[%s670_s0] ss:$8 sps:$4 sm:$0xff]  }
   0x8   :  { %422 = vmatprep.subr.bf16.mxu0 %v476_v5  ;;  %451 = vmatprep.subr.bf16.mxu1 %v515_v1  ;;  %v494_v21 = vld [vmem:[%s671_s3 + $0x18] sm:$0xff]   ;;  %v495_v23 = vld [vmem:[%s671_s3 + $0x20] sm:$0xff]   ;;  %v496_v24 = vld [vmem:[%s671_s3 + $0x28] sm:$0xff]  }
   0x9   :  { %v497_v25 = vld [vmem:[%s671_s3 + $0x30] sm:$0xff]   ;;  %v498_v26 = vld [vmem:[%s671_s3 + $0x38] sm:$0xff]   ;;  %v390_v28 = vld [vmem:[%s672_s2] ss:$0 sm:$0xff]  ;;  %s517_s2 = smov 126  }
   0xa   :  { %v409_v39 = vld [vmem:[%s673_s4] ss:$0 sm:$0xff] }
   0xb   :  { %423 = vmatpush3.bf16.msra.mxu0 %v477_v6  ;;  %452 = vmatpush3.bf16.msra.mxu1 %v492_v16 }
   0xc   :  { %424 = vmatprep.subr.bf16.mxu0 %v478_v7  ;;  %453 = vmatprep.subr.bf16.mxu1 %v515_v1 }
   0xf   :  { %425 = vmatpush3.bf16.msra.mxu0 %v479_v8  ;;  %454 = vmatpush3.bf16.msra.mxu1 %v493_v19 }
  0x10   :  { %426 = vmatprep.subr.bf16.mxu0 %v480_v9  ;;  %455 = vmatprep.subr.bf16.mxu1 %v515_v1 }
  0x13   :  { %427 = vmatpush3.bf16.msra.mxu0 %v481_v10  ;;  %456 = vmatpush3.bf16.msra.mxu1 %v494_v21 }
  0x14   :  { %428 = vmatprep.subr.bf16.mxu0 %v482_v11  ;;  %457 = vmatprep.subr.bf16.mxu1 %v515_v1 }
  0x17   :  { %429 = vmatpush3.bf16.msra.mxu0 %v483_v12  ;;  %458 = vmatpush3.bf16.msra.mxu1 %v495_v23 }
  0x18   :  { %430 = vmatprep.subr.bf16.mxu0 %v484_v15  ;;  %459 = vmatprep.subr.bf16.mxu1 %v515_v1 }
  0x1b   :  { %431 = vmatpush3.bf16.msra.mxu0 %v485_v17  ;;  %460 = vmatpush3.bf16.msra.mxu1 %v496_v24 }
  0x1c   :  { %432 = vmatprep.subr.bf16.mxu0 %v486_v18  ;;  %461 = vmatprep.subr.bf16.mxu1 %v515_v1 }
  0x1f   :  { %433 = vmatpush3.bf16.msra.mxu0 %v487_v20  ;;  %462 = vmatpush3.bf16.msra.mxu1 %v497_v25 }
  0x20   :  { %463 = vmatprep.subr.bf16.mxu1 %v515_v1 }
  0x22   :  { %201 = vmatmul.mubr.bf16.vlgmr.msra.gmra.mrb[0].mxu0 %v488_v22 }
  0x23   :  { %464 = vmatpush3.bf16.msra.mxu1 %v498_v26 }
  0xf5   :  { %v434_v27 = vpop.f32.mrb[0].mxu0 }
  0xf6   :  { %v435_v29 = vpop.f32.mrb[1].mxu0 }
  0xf7   :  { %v436_v30 = vadd.f32 %v435_v29, %v434_v27  ;;  %v437_v31 = vpop.f32.mrb[2].mxu0 }
  0xf8   :  { %v438_v32 = vpop.f32.mrb[3].mxu0 }
  0xf9   :  { %v203_v33 = vadd.f32 %v436_v30, %v390_v28  ;;  %v439_v34 = vadd.f32 %v438_v32, %v437_v31 }
  0xfb   :  { %v206_v35 = vadd.f32 %v439_v34, %v390_v28  ;;  %v209_v36 = vmax.f32 %v203_v33, 0.0 }
  0xfd   :  { %v210_v37 = vmax.f32 %v206_v35, 0.0 }
  0xff   :  { %v211_v38 = vpack.c.bf16 %v210_v37, %v209_v36 }
 0x101   :  { %466 = vmatmul.mubr.bf16.vlgmr.msra.gmra.mrb[0].mxu1 %v211_v38 }
 0x1d4   :  { %v317_v40 = vpop.f32.mrb[0].mxu1 }
 0x1d5   :  { %v641_v41 = vadd.f32 %v409_v39, %v317_v40  ;;  %v467_v42 = vpop.f32.mrb[1].mxu1 }
 0x1d6   :  { %v320_v43 = vpop.f32.mrb[2].mxu1 }
 0x1d7   :  { %v643_v44 = vadd.f32 %v409_v39, %v320_v43  ;;  %v468_v45 = vpop.f32.mrb[3].mxu1  ;;  %v348_v46 = vsel %vm347_vm1, %v641_v41, -inf  ;;  %v325_v47 = vsel %vm324_vm2, %v641_v41, -inf }
 0x1d8   :  { %349 = vmax.xlane.f32.xlu0 %v348_v46  ;;  %326 = vmax.xlane.f32.xlu1 %v325_v47 }
 0x1d9   :  { %v351_v48 = vsel %vm347_vm1, %v643_v44, -inf  ;;  %v328_v49 = vsel %vm324_vm2, %v643_v44, -inf }
 0x1dc   :  { %352 = vmax.xlane.f32.xlu0 %v351_v48  ;;  %329 = vmax.xlane.f32.xlu1 %v328_v49 }
 0x265   :  { %v350_v50 = vpop.xlane.xlu0 %349  ;;  %v327_v57 = vpop.xlane.xlu1 %326 }
 0x266   :  { %v354_v51 = vsub.f32 %v641_v41, %v350_v50  ;;  %v331_v62 = vsub.f32 %v641_v41, %v327_v57 }
 0x268   :  { %v356_v52 = vmul.f32 1.442695, %v354_v51  ;;  %v333_v63 = vmul.f32 1.442695, %v331_v62 }
 0x269   :  { %v353_v53 = vpop.xlane.xlu0 %352  ;;  %v330_v59 = vpop.xlane.xlu1 %329 }
 0x26a   :  { %499 = vpow2.f32 %v356_v52  ;;  %v355_v54 = vsub.f32 %v643_v44, %v353_v53  ;;  %v332_v60 = vsub.f32 %v643_v44, %v330_v59 }
 0x26c   :  { %v358_v55 = vmul.f32 1.442695, %v355_v54  ;;  %v335_v61 = vmul.f32 1.442695, %v332_v60 }
 0x26e   :  { %501 = vpow2.f32 %v358_v55 }
 0x26f   :  { %503 = vpow2.f32 %v335_v61 }
 0x270   :  { %505 = vpow2.f32 %v333_v63 }
 0x274   :  { %v500_v56 = vpop.eup %499 }
 0x275   :  { %362 = vrot.lane.b32.xlu0 %v500_v56, %s517_s2 }
 0x278   :  { %v502_v58 = vpop.eup %501 }
 0x279   :  { %364 = vrot.lane.b32.xlu1 %v502_v58, %s517_s2  ;;  %v504_v0 = vpop.eup %503 }
 0x27a   :  { %v340_v1 = vsel %vm324_vm2, %v504_v0, 0.0  ;;  %v506_v2 = vpop.eup %505 }
 0x27b   :  { %v337_v3 = vsel %vm324_vm2, %v506_v2, 0.0 }
 0x294   :  { %341 = vadd.xlane.f32.xlu0 %v340_v1 }
 0x29d   :  { %338 = vadd.xlane.f32.xlu1 %v337_v3 }
 0x2e7   :  { %v363_v4 = vpop.permute.xlu0 %362 }
 0x2e8   :  { %v368_v5 = vsel %vm324_vm2, %v363_v4, 0.0 }
 0x2e9   :  { %369 = vadd.xlane.f32.xlu0 %v368_v5 }
 0x2eb   :  { %v365_v6 = vpop.permute.xlu1 %364 }
 0x2ec   :  { %v371_v7 = vsel %vm324_vm2, %v365_v6, 0.0 }
 0x2ed   :  { %372 = vadd.xlane.f32.xlu1 %v371_v7 }
 0x321   :  { %v342_v8 = vpop.xlane.xlu0 %341 }
 0x32a   :  { %v339_v9 = vpop.xlane.xlu1 %338 }
 0x32b   :  { %507 = vrcp.f32 %v339_v9 }
 0x335   :  { %v508_v12 = vpop.eup %507 }
 0x336   :  { %v345_v14 = vmul.f32 %v508_v12, %v506_v2 }
 0x376   :  { %v370_v10 = vpop.xlane.xlu0 %369 }
 0x377   :  { %509 = vrcp.f32 %v370_v10 }
 0x378   :  { %511 = vrcp.f32 %v342_v8 }
 0x37a   :  { %v373_v11 = vpop.xlane.xlu1 %372 }
 0x37b   :  { %513 = vrcp.f32 %v373_v11 }
 0x381   :  { %v510_v13 = vpop.eup %509 }
 0x382   :  { %v376_v15 = vmul.f32 %v510_v13, %v500_v56  ;;  %v512_v16 = vpop.eup %511 }
 0x383   :  { %v346_v20 = vmul.f32 %v512_v16, %v504_v0 }
 0x384   :  { %v378_v17 = vsel %vm324_vm2, %v345_v14, %v376_v15 }
 0x385   :  { %v514_v18 = vpop.eup %513  ;;  %v381_v19 = vsel %vm380_vm3, %v378_v17, %v641_v41 }
 0x386   :  { %384 = vst.msk [vmem:[%s674_s5] sm:$0xff] %vm383_vm4, %v381_v19  ;;  %v377_v21 = vmul.f32 %v514_v18, %v502_v58 }
 0x388   :  { %v379_v22 = vsel %vm324_vm2, %v346_v20, %v377_v21 }
 0x389   :  { %v382_v23 = vsel %vm380_vm3, %v379_v22, %v643_v44 }
 0x38a   :  { %385 = vst.msk [vmem:[%s674_s5 + $0x8] sm:$0xff] %vm383_vm4, %v382_v23 }

</bundles_post_ra>
